<compile_context>
chip_gen: v7x
topology: tpu7x:2x2x1
jax: 0.10.0
libtpu: 0.0.40
codegen_flags: <defaults>
</compile_context>

<pallas_src>
import functools

import jax
import jax.numpy as jnp
from jax.experimental import pallas as pl
from jax.experimental.pallas import tpu as pltpu

# ---- logical sizes implied by the module ----
N_VEH = 4
N_RB = N_VEH
N_POWER_LEVELS = 4                                          # len(V2V_power_dB_List_new)
N_INPUT = N_RB + N_VEH * N_RB + N_RB + 1 + N_VEH + 1 + 1    # = 31
N_OUTPUT = N_RB * N_POWER_LEVELS                            # = 16
H1, H2, H3 = 500, 250, 120

# ---- lane-aligned (padded) sizes used by the kernel ----
H1_P, H2_P, H3_P, OUT_P = 512, 256, 128, 128

NEG_BIG = -1.0e30   # padded logit bias -> exp underflows to 0 (masks padded lanes)


def actor_kernel(x_ref,
                 w1_ref, b1_ref,
                 w2_ref, b2_ref,
                 w3_ref, b3_ref,
                 w4_ref, b4_ref,
                 out_ref):
    # x arrives with its true 31-wide feature dim (f32); cast to bf16 in VMEM.
    # The K=31 contraction is handled by the compiler with masking.
    x = x_ref[...].astype(jnp.bfloat16)                                # (tb, 31)

    h = jnp.dot(x, w1_ref[...], preferred_element_type=jnp.float32) + b1_ref[...]
    h = jnp.maximum(h, 0.0).astype(jnp.bfloat16)

    h = jnp.dot(h, w2_ref[...], preferred_element_type=jnp.float32) + b2_ref[...]
    h = jnp.maximum(h, 0.0).astype(jnp.bfloat16)

    h = jnp.dot(h, w3_ref[...], preferred_element_type=jnp.float32) + b3_ref[...]
    h = jnp.maximum(h, 0.0).astype(jnp.bfloat16)

    logits = jnp.dot(h, w4_ref[...], preferred_element_type=jnp.float32) + b4_ref[...]
    # Padded columns of b4 are -1e30 -> those lanes drop out of the softmax.
    m = jnp.max(logits, axis=1, keepdims=True)
    e = jnp.exp(logits - m)
    denom = jnp.sum(e, axis=1, keepdims=True)
    inv = 1.0 / denom            # exact divide (probs may feed PPO log-prob ratios)
    out_ref[...] = (e * inv).astype(out_ref.dtype)


def _round_up(x, m):
    return (x + m - 1) // m * m


@functools.partial(jax.jit, static_argnames=("block_batch",))
def actor_forward(x, params, *, block_batch=2048):
    """x: (batch, N_INPUT) f32 -> (batch, N_OUTPUT) bf16 action probabilities."""
    (w1, b1), (w2, b2), (w3, b3), (w4, b4) = params
    batch = x.shape[0]

    # >= 2 batch blocks whenever batch >= 32 so the "parallel" batch axis can
    # shard across v7x's two TensorCores; blocks are multiples of 16 rows.
    if batch >= 32:
        n_blocks = max(2, pl.cdiv(batch, block_batch))
    else:
        n_blocks = 1
    tb = _round_up(pl.cdiv(batch, n_blocks), 16)
    bp = tb * n_blocks

    # Only row padding (when needed); no feature padding / dtype cast here.
    xp = x if bp == batch else jnp.pad(x, ((0, bp - batch), (0, 0)))

    def resident(shape):
        # Whole-array block, constant index -> DMA'd once, stays VMEM-resident.
        return pl.BlockSpec(shape, lambda i: (0, 0))

    weight_bytes = sum(int(a.size) * a.dtype.itemsize
                       for a in (w1, b1, w2, b2, w3, b3, w4, b4))
    cost = pl.CostEstimate(
        flops=2 * bp * (N_INPUT * H1_P + H1_P * H2_P + H2_P * H3_P + H3_P * OUT_P),
        transcendentals=bp * OUT_P,
        bytes_accessed=bp * N_INPUT * 4 + weight_bytes + bp * OUT_P * 2)

    out_padded = pl.pallas_call(
        actor_kernel,
        out_shape=jax.ShapeDtypeStruct((bp, OUT_P), jnp.bfloat16),
        grid=(n_blocks,),
        in_specs=[
            pl.BlockSpec((tb, N_INPUT), lambda i: (i, 0)),   # x: true 31-wide dim
            resident((N_INPUT, H1_P)), resident((1, H1_P)),  # fc1
            resident((H1_P, H2_P)), resident((1, H2_P)),     # fc2
            resident((H2_P, H3_P)), resident((1, H3_P)),     # fc3
            resident((H3_P, OUT_P)), resident((1, OUT_P)),   # fc4
        ],
        out_specs=pl.BlockSpec((tb, OUT_P), lambda i: (i, 0)),
        compiler_params=pltpu.CompilerParams(
            dimension_semantics=("parallel",)),              # both TCs on v7x
        cost_estimate=cost,
    )(xp, w1, b1, w2, b2, w3, b3, w4, b4)

    return out_padded[:batch, :N_OUTPUT]


def init_params(key):
    """Mimics the PyTorch init (weights ~ N(0, 0.1), biases ~ default Linear
    U(+-1/sqrt(fan_in))), stored transposed as (in, out), zero-padded to
    lane-aligned output widths, weights cast to bf16.  W1 keeps its true
    31-row K dim; the padded columns of the final bias are -1e30 so they never
    appear in the softmax."""
    sizes = [(N_INPUT, H1, N_INPUT, H1_P),
             (H1, H2, H1_P, H2_P),
             (H2, H3, H2_P, H3_P),
             (H3, N_OUTPUT, H3_P, OUT_P)]
    params = []
    for li, (fi, fo, fip, fop) in enumerate(sizes):
        key, kw, kb = jax.random.split(key, 3)
        w = 0.1 * jax.random.normal(kw, (fi, fo), dtype=jnp.float32)
        bound = 1.0 / (fi ** 0.5)
        b = jax.random.uniform(kb, (1, fo), dtype=jnp.float32,
                               minval=-bound, maxval=bound)
        w_p = jnp.zeros((fip, fop), jnp.float32).at[:fi, :fo].set(w)
        w_p = w_p.astype(jnp.bfloat16)
        pad_fill = NEG_BIG if li == len(sizes) - 1 else 0.0
        b_p = jnp.full((1, fop), pad_fill, dtype=jnp.float32).at[:, :fo].set(b)
        params.append((w_p, b_p))
    return params


def reference_forward(x, params):
    """Plain-JAX reference with the same bf16 weights / f32 accumulation."""
    (w1, b1), (w2, b2), (w3, b3), (w4, b4) = params
    xb = x.astype(jnp.bfloat16)
    h = jnp.maximum(jnp.dot(xb, w1, preferred_element_type=jnp.float32) + b1,
                    0.0).astype(jnp.bfloat16)
    h = jnp.maximum(jnp.dot(h, w2, preferred_element_type=jnp.float32) + b2,
                    0.0).astype(jnp.bfloat16)
    h = jnp.maximum(jnp.dot(h, w3, preferred_element_type=jnp.float32) + b3,
                    0.0).astype(jnp.bfloat16)
    logits = jnp.dot(h, w4, preferred_element_type=jnp.float32) + b4
    return jax.nn.softmax(logits, axis=1)[:, :N_OUTPUT]


if __name__ == "__main__":
    key = jax.random.PRNGKey(0)
    key, kx = jax.random.split(key)

    # e.g. all n_veh * n_RB agents over several env steps batched into one call
    batch = 64
    x = jax.random.normal(kx, (batch, N_INPUT), dtype=jnp.float32)
    params = init_params(key)

    out = actor_forward(x, params)
    out = jax.block_until_ready(out)
    out_f32 = out.astype(jnp.float32)

    ref = reference_forward(x, params)

    assert out.shape == (batch, N_OUTPUT)
    # rows are probability distributions (bf16 output -> loose tolerance)
    assert jnp.allclose(jnp.sum(out_f32, axis=1), 1.0, atol=1e-2)
    assert jnp.allclose(out_f32, ref, atol=5e-3, rtol=2e-2)

    print("KERNEL_OK")
</pallas_src>

<mosaic_0001>
module attributes {stable_mosaic.version = 11 : i64} {
  func.func @actor_kernel(%arg0: i32, %arg1: memref<32x31xf32, #tpu.memory_space<vmem>>, %arg2: memref<31x512xbf16, #tpu.memory_space<vmem>>, %arg3: memref<1x512xf32, #tpu.memory_space<vmem>>, %arg4: memref<512x256xbf16, #tpu.memory_space<vmem>>, %arg5: memref<1x256xf32, #tpu.memory_space<vmem>>, %arg6: memref<256x128xbf16, #tpu.memory_space<vmem>>, %arg7: memref<1x128xf32, #tpu.memory_space<vmem>>, %arg8: memref<128x128xbf16, #tpu.memory_space<vmem>>, %arg9: memref<1x128xf32, #tpu.memory_space<vmem>>, %arg10: memref<32x128xbf16, #tpu.memory_space<vmem>>) attributes {dimension_semantics = [#tpu.dimension_semantics<parallel>], iteration_bounds = array<i64: 2>, scalar_prefetch = 0 : i64, scratch_operands = 0 : i64, tpu.core_type = #tpu.core_type<tc>, window_params = [{transform_indices = @transform_0, window_bounds = array<i64: 32, 31>}, {pipeline_mode = #tpu.pipeline_mode<synchronous>, transform_indices = @transform_1, window_bounds = array<i64: 31, 512>}, {pipeline_mode = #tpu.pipeline_mode<synchronous>, transform_indices = @transform_2, window_bounds = array<i64: 1, 512>}, {pipeline_mode = #tpu.pipeline_mode<synchronous>, transform_indices = @transform_3, window_bounds = array<i64: 512, 256>}, {pipeline_mode = #tpu.pipeline_mode<synchronous>, transform_indices = @transform_4, window_bounds = array<i64: 1, 256>}, {pipeline_mode = #tpu.pipeline_mode<synchronous>, transform_indices = @transform_5, window_bounds = array<i64: 256, 128>}, {pipeline_mode = #tpu.pipeline_mode<synchronous>, transform_indices = @transform_6, window_bounds = array<i64: 1, 128>}, {pipeline_mode = #tpu.pipeline_mode<synchronous>, transform_indices = @transform_7, window_bounds = array<i64: 128, 128>}, {pipeline_mode = #tpu.pipeline_mode<synchronous>, transform_indices = @transform_8, window_bounds = array<i64: 1, 128>}, {transform_indices = @transform_9, window_bounds = array<i64: 32, 128>}]} {
    %c0 = arith.constant 0 : index
    %c0_0 = arith.constant 0 : index
    %0 = vector.load %arg1[%c0, %c0_0] : memref<32x31xf32, #tpu.memory_space<vmem>>, vector<32x31xf32>
    %1 = arith.truncf %0 : vector<32x31xf32> to vector<32x31xbf16>
    %c0_1 = arith.constant 0 : index
    %c0_2 = arith.constant 0 : index
    %2 = vector.load %arg2[%c0_1, %c0_2] : memref<31x512xbf16, #tpu.memory_space<vmem>>, vector<31x512xbf16>
    %cst = arith.constant dense<0.000000e+00> : vector<32x512xf32>
    %3 = tpu.matmul %1, %2, %cst {dimension_numbers = #tpu.dot_dimension_numbers<[1], [0], [0], [1], [0, 0, 1, 1], [], []>} : vector<32x31xbf16>, vector<31x512xbf16>, vector<32x512xf32> -> vector<32x512xf32>
    %c0_3 = arith.constant 0 : index
    %c0_4 = arith.constant 0 : index
    %4 = vector.load %arg3[%c0_3, %c0_4] : memref<1x512xf32, #tpu.memory_space<vmem>>, vector<1x512xf32>
    %5 = vector.broadcast %4 : vector<1x512xf32> to vector<32x512xf32>
    %6 = arith.addf %3, %5 : vector<32x512xf32>
    %cst_5 = arith.constant 0.000000e+00 : f32
    %7 = vector.broadcast %cst_5 : f32 to vector<32x512xf32>
    %8 = arith.maximumf %6, %7 : vector<32x512xf32>
    %9 = arith.truncf %8 : vector<32x512xf32> to vector<32x512xbf16>
    %c0_6 = arith.constant 0 : index
    %c0_7 = arith.constant 0 : index
    %10 = vector.load %arg4[%c0_6, %c0_7] : memref<512x256xbf16, #tpu.memory_space<vmem>>, vector<512x256xbf16>
    %cst_8 = arith.constant dense<0.000000e+00> : vector<32x256xf32>
    %11 = tpu.matmul %9, %10, %cst_8 {dimension_numbers = #tpu.dot_dimension_numbers<[1], [0], [0], [1], [0, 0, 1, 1], [], []>} : vector<32x512xbf16>, vector<512x256xbf16>, vector<32x256xf32> -> vector<32x256xf32>
    %c0_9 = arith.constant 0 : index
    %c0_10 = arith.constant 0 : index
    %12 = vector.load %arg5[%c0_9, %c0_10] : memref<1x256xf32, #tpu.memory_space<vmem>>, vector<1x256xf32>
    %13 = vector.broadcast %12 : vector<1x256xf32> to vector<32x256xf32>
    %14 = arith.addf %11, %13 : vector<32x256xf32>
    %cst_11 = arith.constant 0.000000e+00 : f32
    %15 = vector.broadcast %cst_11 : f32 to vector<32x256xf32>
    %16 = arith.maximumf %14, %15 : vector<32x256xf32>
    %17 = arith.truncf %16 : vector<32x256xf32> to vector<32x256xbf16>
    %c0_12 = arith.constant 0 : index
    %c0_13 = arith.constant 0 : index
    %18 = vector.load %arg6[%c0_12, %c0_13] : memref<256x128xbf16, #tpu.memory_space<vmem>>, vector<256x128xbf16>
    %cst_14 = arith.constant dense<0.000000e+00> : vector<32x128xf32>
    %19 = tpu.matmul %17, %18, %cst_14 {dimension_numbers = #tpu.dot_dimension_numbers<[1], [0], [0], [1], [0, 0, 1, 1], [], []>} : vector<32x256xbf16>, vector<256x128xbf16>, vector<32x128xf32> -> vector<32x128xf32>
    %c0_15 = arith.constant 0 : index
    %c0_16 = arith.constant 0 : index
    %20 = vector.load %arg7[%c0_15, %c0_16] : memref<1x128xf32, #tpu.memory_space<vmem>>, vector<1x128xf32>
    %21 = vector.broadcast %20 : vector<1x128xf32> to vector<32x128xf32>
    %22 = arith.addf %19, %21 : vector<32x128xf32>
    %cst_17 = arith.constant 0.000000e+00 : f32
    %23 = vector.broadcast %cst_17 : f32 to vector<32x128xf32>
    %24 = arith.maximumf %22, %23 : vector<32x128xf32>
    %25 = arith.truncf %24 : vector<32x128xf32> to vector<32x128xbf16>
    %c0_18 = arith.constant 0 : index
    %c0_19 = arith.constant 0 : index
    %26 = vector.load %arg8[%c0_18, %c0_19] : memref<128x128xbf16, #tpu.memory_space<vmem>>, vector<128x128xbf16>
    %cst_20 = arith.constant dense<0.000000e+00> : vector<32x128xf32>
    %27 = tpu.matmul %25, %26, %cst_20 {dimension_numbers = #tpu.dot_dimension_numbers<[1], [0], [0], [1], [0, 0, 1, 1], [], []>} : vector<32x128xbf16>, vector<128x128xbf16>, vector<32x128xf32> -> vector<32x128xf32>
    %c0_21 = arith.constant 0 : index
    %c0_22 = arith.constant 0 : index
    %28 = vector.load %arg9[%c0_21, %c0_22] : memref<1x128xf32, #tpu.memory_space<vmem>>, vector<1x128xf32>
    %29 = vector.broadcast %28 : vector<1x128xf32> to vector<32x128xf32>
    %30 = arith.addf %27, %29 : vector<32x128xf32>
    %cst_23 = arith.constant dense<0xFF800000> : vector<32xf32>
    %31 = vector.multi_reduction <maximumf>, %30, %cst_23 [1] : vector<32x128xf32> to vector<32xf32>
    %32 = vector.shape_cast %31 : vector<32xf32> to vector<32x1xf32>
    %33 = vector.broadcast %32 : vector<32x1xf32> to vector<32x128xf32>
    %34 = arith.subf %30, %33 : vector<32x128xf32>
    %35 = math.exp %34 : vector<32x128xf32>
    %cst_24 = arith.constant dense<0.000000e+00> : vector<32xf32>
    %36 = vector.multi_reduction <add>, %35, %cst_24 [1] : vector<32x128xf32> to vector<32xf32>
    %37 = vector.shape_cast %36 : vector<32xf32> to vector<32x1xf32>
    %cst_25 = arith.constant 1.000000e+00 : f32
    %38 = vector.broadcast %cst_25 : f32 to vector<32x1xf32>
    %39 = arith.divf %38, %37 : vector<32x1xf32>
    %40 = vector.broadcast %39 : vector<32x1xf32> to vector<32x128xf32>
    %41 = arith.mulf %35, %40 : vector<32x128xf32>
    %42 = arith.truncf %41 : vector<32x128xf32> to vector<32x128xbf16>
    %c0_26 = arith.constant 0 : index
    %c0_27 = arith.constant 0 : index
    %43 = vector.load %arg10[%c0_26, %c0_27] : memref<32x128xbf16, #tpu.memory_space<vmem>>, vector<32x128xbf16>
    tpu.vector_store %arg10[%c0_26, %c0_27], %42 {strides = array<i32>} : memref<32x128xbf16, #tpu.memory_space<vmem>>, vector<32x128xbf16>,
    return
  }
  func.func @transform_0(%arg0: i32) -> (i32, i32) {
    %c0_i32 = arith.constant 0 : i32
    %c0_i32_0 = arith.constant 0 : i32
    return %arg0, %c0_i32 : i32, i32
  }
  func.func @transform_1(%arg0: i32) -> (i32, i32) {
    %c0_i32 = arith.constant 0 : i32
    %c0_i32_0 = arith.constant 0 : i32
    %c0_i32_1 = arith.constant 0 : i32
    return %c0_i32, %c0_i32_0 : i32, i32
  }
  func.func @transform_2(%arg0: i32) -> (i32, i32) {
    %c0_i32 = arith.constant 0 : i32
    %c0_i32_0 = arith.constant 0 : i32
    %c0_i32_1 = arith.constant 0 : i32
    return %c0_i32, %c0_i32_0 : i32, i32
  }
  func.func @transform_3(%arg0: i32) -> (i32, i32) {
    %c0_i32 = arith.constant 0 : i32
    %c0_i32_0 = arith.constant 0 : i32
    %c0_i32_1 = arith.constant 0 : i32
    return %c0_i32, %c0_i32_0 : i32, i32
  }
  func.func @transform_4(%arg0: i32) -> (i32, i32) {
    %c0_i32 = arith.constant 0 : i32
    %c0_i32_0 = arith.constant 0 : i32
    %c0_i32_1 = arith.constant 0 : i32
    return %c0_i32, %c0_i32_0 : i32, i32
  }
  func.func @transform_5(%arg0: i32) -> (i32, i32) {
    %c0_i32 = arith.constant 0 : i32
    %c0_i32_0 = arith.constant 0 : i32
    %c0_i32_1 = arith.constant 0 : i32
    return %c0_i32, %c0_i32_0 : i32, i32
  }
  func.func @transform_6(%arg0: i32) -> (i32, i32) {
    %c0_i32 = arith.constant 0 : i32
    %c0_i32_0 = arith.constant 0 : i32
    %c0_i32_1 = arith.constant 0 : i32
    return %c0_i32, %c0_i32_0 : i32, i32
  }
  func.func @transform_7(%arg0: i32) -> (i32, i32) {
    %c0_i32 = arith.constant 0 : i32
    %c0_i32_0 = arith.constant 0 : i32
    %c0_i32_1 = arith.constant 0 : i32
    return %c0_i32, %c0_i32_0 : i32, i32
  }
  func.func @transform_8(%arg0: i32) -> (i32, i32) {
    %c0_i32 = arith.constant 0 : i32
    %c0_i32_0 = arith.constant 0 : i32
    %c0_i32_1 = arith.constant 0 : i32
    return %c0_i32, %c0_i32_0 : i32, i32
  }
  func.func @transform_9(%arg0: i32) -> (i32, i32) {
    %c0_i32 = arith.constant 0 : i32
    %c0_i32_0 = arith.constant 0 : i32
    return %arg0, %c0_i32 : i32, i32
  }
}

</mosaic_0001>

<bundles_post_ra>
// kernel: actor_forward.1
= control target key start
LH: loop header
LB: loop body
LE: loop exit
PB: predicated region body
PF: predicated region fallthrough
CT: control target
= control target key end

     0   :  { %14 = vsyncpa [#allocation3], 0  ;;  %s2342_s0 = inlined_call_operand.vmem [shape: f32[64,31], index: 0, kind: input, shape index: {}]   ;;  %s2343_s1 = inlined_call_operand.vmem [shape: bf16[31,512], index: 1, kind: input, shape index: {}]   ;;  %s2344_s2 = inlined_call_operand.vmem [shape: f32[1,512], index: 2, kind: input, shape index: {}]   ;;  %s2345_s3 = inlined_call_operand.hbm [shape: bf16[512,256], index: 3, kind: input, shape index: {}]   ;;  %s2346_s4 = inlined_call_operand.vmem [shape: f32[1,256], index: 4, kind: input, shape index: {}]   ;;  %s2347_s5 = inlined_call_operand.hbm [shape: bf16[256,128], index: 5, kind: input, shape index: {}]   ;;  %s2348_s6 = inlined_call_operand.vmem [shape: f32[1,128], index: 6, kind: input, shape index: {}]   ;;  %s2349_s7 = inlined_call_operand.hbm [shape: bf16[128,128], index: 7, kind: input, shape index: {}]   ;;  %s2350_s8 = inlined_call_operand.vmem [shape: f32[1,128], index: 8, kind: input, shape index: {}]   ;;  %s2351_s9 = inlined_call_operand.vmem [shape: bf16[64,128], index: 9, kind: output, shape index: {}]  }
   0x1   :  { %15 = vsyncpa [#allocation5], 0  ;;  %s2141_s30 = smov 0  }
   0x2 LB: > { %s2082_s10 = smov [#allocation4]   ;;  %s1577_s12 = sadd.s32 4294967295, %s2080_s30   ;;  %s2080_s30 = sphi %s2141_s30, %s21_s30  }
   0x3   : > { %s280_s11 = sshll.u32 %s2082_s10, 4  ;;  %p1579_p0 = scmp.ge.s32.totalorder %s2080_s30, 1  ;;  %s2159_s11 = int_to_ptr.vmem [resolvable:$true] %s280_s11 }
   0x4   : > { %p246_p1 = scmp.lt.s32.totalorder %s2080_s30, 3  ;;  %p2151_p2 = scmp.eq.s32.totalorder %s1577_s12, 0 }
   0x5   : > { %s2083_s15 = smov [#allocation2]   ;;  %s2084_s18 = smov [#allocation6]  }
   0x6   : > { %s2355_s13 = scalar_select %p2151_p2, 1, 0 }
   0x7   : > { %p2155_p3 = pnand %p1579_p0, %p246_p1  ;;  %s264_s16 = sshll.u32 %s2083_s15, 4  ;;  %s2163_s16 = int_to_ptr.vmem [resolvable:$true] %s264_s16 }
   0x8   : > { %s2171_s19 = sshll.u32 %s2084_s18, 4  ;;  %s1982_s22 = scalar_lea.hbm %s2347_s5, 2048  ;;  %s297_s19 = int_to_ptr.vmem [resolvable:$true] %s2171_s19 }
   0x9   : > { %s2356_s14 = scalar_select %p2155_p3, 1, 0 }
   0xa   : > { %p1801_p4 = pneg %p2155_p3  ;;  %p1983_p6 = scmp.ne.s32.totalorder %s2347_s5, %s1982_s22 }
   0xb   : > { %p1989_p10 = scmp.lt.u32.totalorder %s1982_s22, %s2347_s5 }
   0xc   : > { %p2167_p5 = pnand %p2151_p2, %p1801_p4 }
   0xe   : > { %p2181_p7 = pneg %p2167_p5 }
  0x10   : > { %p1985_p8 = pnand %p2181_p7, %p1983_p6 }
  0x12   : > { %p1986_p9 = pneg %p1985_p8 }
  0x14   : > { %p1991_p11 = pnand %p1989_p10, %p1986_p9 }
  0x16   : > { %1994 = shalt.err (!%p1991_p11)
}
  0x17   : > { %s1995_s28 = scalar_lea.vmem %s2159_s11, 2048  ;;  %p2003_p1 = scmp.lt.s32.totalorder %s2159_s11, %s2159_s11 }
  0x18   : > { %p1996_p12 = scmp.ne.s32.totalorder %s2159_s11, %s1995_s28  ;;  %p2004_p4 = scmp.lt.s32.totalorder %s1995_s28, %s1995_s28 }
  0x1a   : > { %p1998_p13 = pnand %p1996_p12, %p2181_p7  ;;  %p2005_p6 = por %p2004_p4, %p2003_p1 }
  0x1c   : > { %p1999_p0 = pneg %p1998_p13 }
  0x1e   : > { %p2006_p8 = pnand %p2005_p6, %p1999_p0 }
  0x20   : > { %2009 = shalt.err (!%p2006_p8)
}
  0x21   : > { %s2085_s29 = smov 64   ;;  %s2086_s10 = smov 4  }
  0x22   : > { %1807 = dma.hbm_to_vmem [thread:$0]  (!%p2167_p5), %s2347_s5, 2048, %s2159_s11, [#allocation5], %s2085_s29, %s2085_s29, %s2086_s10  }
  0x23   : > { %s2010_s22 = scalar_lea.hbm %s2345_s3, 8192 }
  0x24   : > { %p2011_p9 = scmp.ne.s32.totalorder %s2345_s3, %s2010_s22  ;;  %p2017_p12 = scmp.lt.u32.totalorder %s2010_s22, %s2345_s3 }
  0x26   : > { %p2013_p10 = pnand %p2011_p9, %p2181_p7 }
  0x28   : > { %p2014_p11 = pneg %p2013_p10 }
  0x2a   : > { %p2019_p13 = pnand %p2017_p12, %p2014_p11 }
  0x2c   : > { %2022 = shalt.err (!%p2019_p13)
}
  0x2d   : > { %s2023_s11 = scalar_lea.vmem %s2163_s16, 8192  ;;  %p2031_p6 = scmp.lt.s32.totalorder %s2163_s16, %s2163_s16 }
  0x2e   : > { %p2024_p0 = scmp.ne.s32.totalorder %s2163_s16, %s2023_s11  ;;  %p2032_p8 = scmp.lt.s32.totalorder %s2023_s11, %s2023_s11 }
  0x30   : > { %p2026_p1 = pnand %p2024_p0, %p2181_p7  ;;  %p2033_p9 = por %p2032_p8, %p2031_p6 }
  0x32   : > { %p2027_p4 = pneg %p2026_p1 }
  0x34   : > { %p2034_p10 = pnand %p2033_p9, %p2027_p4 }
  0x36   : > { %2037 = shalt.err (!%p2034_p10)
}
  0x37   : > { %s2087_s28 = smov 128   ;;  %s2088_s15 = smov 8  }
  0x38   : > { %1804 = dma.hbm_to_vmem [thread:$0]  (!%p2167_p5), %s2345_s3, 8192, %s2163_s16, [#allocation3], %s2087_s28, %s2087_s28, %s2088_s15  }
  0x39   : > { %s2038_s23 = scalar_lea.hbm %s2349_s7, 1024 }
  0x3a   : > { %p2039_p11 = scmp.ne.s32.totalorder %s2349_s7, %s2038_s23  ;;  %p2045_p0 = scmp.lt.u32.totalorder %s2038_s23, %s2349_s7 }
  0x3c   : > { %p2041_p12 = pnand %p2039_p11, %p2181_p7 }
  0x3e   : > { %p2042_p13 = pneg %p2041_p12 }
  0x40   : > { %p2047_p1 = pnand %p2045_p0, %p2042_p13 }
  0x42   : > { %2050 = shalt.err (!%p2047_p1)
}
  0x43   : > { %s2051_s18 = scalar_lea.vmem %s297_s19, 1024  ;;  %p2059_p9 = scmp.lt.s32.totalorder %s297_s19, %s297_s19 }
  0x44   : > { %p2052_p4 = scmp.ne.s32.totalorder %s297_s19, %s2051_s18  ;;  %p2060_p10 = scmp.lt.s32.totalorder %s2051_s18, %s2051_s18 }
  0x46   : > { %p2054_p6 = pnand %p2052_p4, %p2181_p7  ;;  %p2061_p2 = por %p2060_p10, %p2059_p9 }
  0x48   : > { %p2055_p8 = pneg %p2054_p6 }
  0x4a   : > { %p2062_p3 = pnand %p2061_p2, %p2055_p8 }
  0x4c   : > { %2065 = shalt.err (!%p2062_p3)
}
  0x4d   : > { %1810 = dma.hbm_to_vmem [thread:$0]  (!%p2167_p5), %s2349_s7, 1024, %s297_s19, [#allocation5], %s2085_s29, %s2085_s29, %s2086_s10  }
  0x4e   : > { %p2359_p11 = scmp.ne.s32.totalorder %s2356_s14, 0 }
  0x4f   : > { %p2360_p7 = scmp.ne.s32.totalorder (!%p2359_p11), %s2355_s13, 0 }
  0x50   : > { %324 = sbr.rel (%p2359_p11) target bundleno = 1377 (0x561), region = 56 }
  0x57   : > { %2071 = dma.done.wait (%p2360_p7), [#allocation3], 8192  }
  0x58   : > { %2073 = vsyncadd (%p2360_p7), [#allocation3], 4294959104 }
  0x59   : > { %2075 = dma.done.wait (%p2360_p7), [#allocation5], 3072  }
  0x5a   : > { %2077 = vsyncadd (%p2360_p7), [#allocation5], 4294964224  ;;  %v2089_v0 = vmov 0   ;;  %s1588_s17 = sshll.u32 %s1577_s12, 2  ;;  %vm460_vm0 = vcmask 1046528   ;;  %vm461_vm1 = vcmask 1047552  }
  0x5b   : > { %508 = vmatprep.mubr.bf16.mxu1 %v2089_v0  ;;  %p369_p2 = scmp.lt.s32.totalorder %s1588_s17, 7  ;;  %v2090_v1 = vmov 65535   ;;  %v1834_v3 = vld [vmem:[%s2343_s1 + $0x4] ss:$16 sps:$4 sm:$0xff]   ;;  %v1836_v4 = vld [vmem:[%s2343_s1] ss:$16 sps:$4 sm:$0xff]  }
  0x5c   : > { %v462_v2 = vsel %vm460_vm0, 4294967295, %v2090_v1  ;;  %476 = vmatprep.subr.bf16.mxu1 %v1834_v3  ;;  %v1837_v6 = vld [vmem:[%s2343_s1 + $0x24] ss:$16 sps:$4 sm:$0xff]   ;;  %v1839_v7 = vld [vmem:[%s2343_s1 + $0x20] ss:$16 sps:$4 sm:$0xff]   ;;  %vm453_vm2 = vcmask 252928  }
  0x5d   : > { %s2362_s17 = smov (!%p369_p2, %s1588_s17), 7  ;;  %v463_v5 = vsel %vm461_vm1, %v462_v2, 0  ;;  %477 = vmatpush1.bf16.msra.mxu1 %v1836_v4  ;;  %v1842_v12 = vld [vmem:[%s2343_s1 + $0xc] ss:$16 sps:$4 sm:$0xff]   ;;  %v1840_v13 = vld [vmem:[%s2343_s1 + $0x8] ss:$16 sps:$4 sm:$0xff]   ;;  %v397_v2 = vlaneseq }
  0x5e   : > { %s1589_s14 = sshll.u32 %s2362_s17, 3  ;;  %v468_v10 = vand.u32 %v1837_v6, %v463_v5  ;;  %v465_v11 = vand.u32 %v1839_v7, %v463_v5  ;;  %v1843_v15 = vld [vmem:[%s2343_s1 + $0x28] ss:$16 sps:$4 sm:$0xff]   ;;  %v1845_v16 = vld [vmem:[%s2343_s1 + $0x2c] ss:$16 sps:$4 sm:$0xff]   ;;  %v1942_v55 = vld [vmem:[#allocation4 + $0x40] sm:$0xff]  }
  0x5f   : > { %s2272_s10 = scalar_lea.vmem %s2342_s0, %s1589_s14  ;;  %v1846_v17 = vld [vmem:[#allocation2 + $0x4] ss:$8 sps:$4 sm:$0xff]   ;;  %v1848_v18 = vld [vmem:[#allocation2] ss:$8 sps:$4 sm:$0xff]   ;;  %v474_v19 = vand.u32 %v1845_v16, %v463_v5  ;;  %v1849_v20 = vld [vmem:[#allocation2 + $0x14] ss:$8 sps:$4 sm:$0xff]   ;;  %v471_v24 = vand.u32 %v1843_v15, %v463_v5 }
  0x60   : > { %v381_v8 = vld [vmem:[%s2272_s10] sm:$0xff]  ;;  %v382_v9 = vld [vmem:[%s2272_s10 + $0x8] sm:$0xff]  ;;  %478 = vmatprep.subr.bf16.mxu1 %v468_v10  ;;  %1002 = vmatprep.subr.bf16.mxu0 %v1846_v17  ;;  %v383_v21 = vld [vmem:[%s2272_s10 + $0x10] sm:$0xff]  ;;  %v2306_v3 = vshrl.u32 %v397_v2, 7  ;;  %s1591_s21 = sshll.u32 %s2362_s17, 2 }
  0x61   : > { %v385_v14 = vpack.c.bf16 %v382_v9, %v381_v8  ;;  %479 = vmatpush1.bf16.msra.mxu1 %v465_v11  ;;  %1003 = vmatpush1.bf16.msra.mxu0 %v1848_v18  ;;  %v1851_v22 = vld [vmem:[#allocation2 + $0x10] ss:$8 sps:$4 sm:$0xff]   ;;  %v1852_v25 = vld [vmem:[#allocation2 + $0x24] ss:$8 sps:$4 sm:$0xff]   ;;  %v1854_v27 = vld [vmem:[#allocation2 + $0x20] ss:$8 sps:$4 sm:$0xff]   ;;  %s378_s24 = scalar_lea.vmem %s2351_s9, %s1591_s21 }
  0x62   : > { %529 = vmatprep.subr.bf16.mxu1 %v1842_v12  ;;  %v384_v23 = vld [vmem:[%s2272_s10 + $0x18] sm:$0xff]  ;;  %1004 = vmatprep.subr.bf16.mxu0 %v1849_v20  ;;  %v1858_v30 = vld [vmem:[#allocation2 + $0x44] ss:$8 sps:$4 sm:$0xff]   ;;  %v1860_v31 = vld [vmem:[#allocation2 + $0x40] ss:$8 sps:$4 sm:$0xff]   ;;  %v399_v4 = vsub.s32 0, %v2306_v3 }
  0x63   : > { %v386_v26 = vpack.c.bf16 %v384_v23, %v383_v21  ;;  %v1855_v28 = vld [vmem:[#allocation2 + $0x34] ss:$8 sps:$4 sm:$0xff]   ;;  %v1857_v29 = vld [vmem:[#allocation2 + $0x30] ss:$8 sps:$4 sm:$0xff]   ;;  %v1864_v34 = vld [vmem:[#allocation2 + $0x64] ss:$8 sps:$4 sm:$0xff]  }
  0x64   : > { %1600 = vmatmul.mubr.msk.bf16.vlgmr.msra.gmra.mrb[0].mxu1 %vm453_vm2, %v385_v14  ;;  %v1861_v32 = vld [vmem:[#allocation2 + $0x54] ss:$8 sps:$4 sm:$0xff]   ;;  %v1863_v33 = vld [vmem:[#allocation2 + $0x50] ss:$8 sps:$4 sm:$0xff]   ;;  %v1866_v35 = vld [vmem:[#allocation2 + $0x60] ss:$8 sps:$4 sm:$0xff]  }
  0x65   : > { %530 = vmatpush1.bf16.msra.mxu1 %v1840_v13  ;;  %518 = vmatprep.mubr.bf16.mxu1 %v2089_v0  ;;  %v1867_v36 = vld [vmem:[#allocation2 + $0x74] ss:$8 sps:$4 sm:$0xff]   ;;  %v1869_v37 = vld [vmem:[#allocation2 + $0x70] ss:$8 sps:$4 sm:$0xff]   ;;  %v1870_v38 = vld [vmem:[#allocation2 + $0x84] ss:$8 sps:$4 sm:$0xff]  }
  0x66   : > { %531 = vmatprep.subr.bf16.mxu1 %v474_v19  ;;  %1005 = vmatpush1.bf16.msra.mxu0 %v1851_v22  ;;  %v1872_v39 = vld [vmem:[#allocation2 + $0x80] ss:$8 sps:$4 sm:$0xff]   ;;  %v1873_v40 = vld [vmem:[#allocation2 + $0x94] ss:$8 sps:$4 sm:$0xff]   ;;  %v1875_v41 = vld [vmem:[#allocation2 + $0x90] ss:$8 sps:$4 sm:$0xff]  }
  0x67   : > { %1006 = vmatprep.subr.bf16.mxu0 %v1852_v25  ;;  %v1876_v42 = vld [vmem:[#allocation2 + $0xa4] ss:$8 sps:$4 sm:$0xff]   ;;  %v1878_v43 = vld [vmem:[#allocation2 + $0xa0] ss:$8 sps:$4 sm:$0xff]   ;;  %v1879_v44 = vld [vmem:[#allocation2 + $0xb4] ss:$8 sps:$4 sm:$0xff]  }
  0x68   : > { %v1881_v45 = vld [vmem:[#allocation2 + $0xb0] ss:$8 sps:$4 sm:$0xff]   ;;  %v1882_v46 = vld [vmem:[#allocation2 + $0xc4] ss:$8 sps:$4 sm:$0xff]   ;;  %v1884_v47 = vld [vmem:[#allocation2 + $0xc0] ss:$8 sps:$4 sm:$0xff]  }
  0x69   : > { %532 = vmatpush1.bf16.msra.mxu1 %v471_v24  ;;  %v1885_v48 = vld [vmem:[#allocation2 + $0xd4] ss:$8 sps:$4 sm:$0xff]   ;;  %v1887_v49 = vld [vmem:[#allocation2 + $0xd0] ss:$8 sps:$4 sm:$0xff]   ;;  %v1888_v50 = vld [vmem:[#allocation2 + $0xe4] ss:$8 sps:$4 sm:$0xff]  }
  0x6a   : > { %1007 = vmatpush1.bf16.msra.mxu0 %v1854_v27  ;;  %v1890_v51 = vld [vmem:[#allocation2 + $0xe0] ss:$8 sps:$4 sm:$0xff]   ;;  %v1891_v52 = vld [vmem:[#allocation2 + $0xf4] ss:$8 sps:$4 sm:$0xff]   ;;  %v1893_v53 = vld [vmem:[#allocation2 + $0xf0] ss:$8 sps:$4 sm:$0xff]   ;;  %1715 = vmatprep.subr.bf16.mxu1 %v1942_v55 }
  0x6b   : > { %1008 = vmatprep.subr.bf16.mxu0 %v1855_v28  ;;  %v1896_v54 = vld [vmem:[#allocation2 + $0x104] ss:$8 sps:$4 sm:$0xff]   ;;  %v1946_v59 = vld [vmem:[#allocation4 + $0x50] sm:$0xff]   ;;  %v1948_v61 = vld [vmem:[#allocation4 + $0x58] sm:$0xff]   ;;  %v403_v6 = vsub.s32 1, %v2306_v3  ;;  %v407_v28 = vsub.s32 2, %v2306_v3 }
  0x6c   : > { %1601 = vmatmul.mubr.msk.bf16.gmra.mrb[4].mxu1 %vm453_vm2, %v386_v26  ;;  %v1943_v56 = vld [vmem:[#allocation4] sm:$0xff]   ;;  %v1944_v57 = vld [vmem:[#allocation4 + $0x48] sm:$0xff]   ;;  %v1947_v60 = vld [vmem:[#allocation4 + $0x10] sm:$0xff]  }
  0x6d   : > { %561 = vmatprep.mubr.bf16.mxu1 %v2089_v0  ;;  %v1945_v58 = vld [vmem:[#allocation4 + $0x8] sm:$0xff]   ;;  %v1949_v62 = vld [vmem:[#allocation4 + $0x18] sm:$0xff]   ;;  %v1950_v63 = vld [vmem:[#allocation4 + $0x60] sm:$0xff]  }
  0x6e   : > { %1009 = vmatpush1.bf16.msra.mxu0 %v1857_v29  ;;  %v1952_v1 = vld [vmem:[#allocation4 + $0x68] sm:$0xff]   ;;  %v395_v5 = vld [vmem:[%s2344_s2] sm:$0xf]  ;;  %v1899_v25 = vld [vmem:[#allocation2 + $0x114] ss:$8 sps:$4 sm:$0xff]  }
  0x6f   : > { %1010 = vmatprep.subr.bf16.mxu0 %v1858_v30  ;;  %v400_v7 = vrot.slane %v395_v5, %v399_v4  ;;  %v404_v8 = vrot.slane %v395_v5, %v403_v6  ;;  %v1894_v23 = vld [vmem:[#allocation2 + $0x100] ss:$8 sps:$4 sm:$0xff]   ;;  %v1903_v55 = vld [vmem:[#allocation2 + $0x130] ss:$8 sps:$4 sm:$0xff]  }
  0x72   : > { %1011 = vmatpush1.bf16.msra.mxu0 %v1860_v31  ;;  %v411_v31 = vsub.s32 3, %v2306_v3 }
  0x73   : > { %1012 = vmatprep.subr.bf16.mxu0 %v1861_v32 }
  0x74   : > { %1602 = vmatmul.mubr.msk.bf16.vlgmr.msra.gmra.mrb[8].mxu1 %vm453_vm2, %v385_v14 }
  0x75   : > { %571 = vmatprep.mubr.bf16.mxu1 %v2089_v0  ;;  %1716 = vmatpush3.bf16.msra.mxu1 %v1943_v56  ;;  %v1951_v0 = vld [vmem:[#allocation4 + $0x20] sm:$0xff]  }
  0x76   : > { %1013 = vmatpush1.bf16.msra.mxu0 %v1863_v33  ;;  %1717 = vmatprep.subr.bf16.mxu1 %v1944_v57 }
  0x77   : > { %1014 = vmatprep.subr.bf16.mxu0 %v1864_v34 }
  0x79   : > { %1718 = vmatpush3.bf16.msra.mxu1 %v1945_v58  ;;  %v1908_v58 = vld [vmem:[#allocation2 + $0x144] ss:$8 sps:$4 sm:$0xff]  }
  0x7a   : > { %1015 = vmatpush1.bf16.msra.mxu0 %v1866_v35  ;;  %1719 = vmatprep.subr.bf16.mxu1 %v1946_v59  ;;  %v1897_v35 = vld [vmem:[#allocation2 + $0x110] ss:$8 sps:$4 sm:$0xff]  }
  0x7b   : > { %1016 = vmatprep.subr.bf16.mxu0 %v1867_v36 }
  0x7c   : > { %1603 = vmatmul.mubr.msk.bf16.gmra.mrb[12].mxu1 %vm453_vm2, %v386_v26 }
  0x7d   : > { %1720 = vmatpush3.bf16.msra.mxu1 %v1947_v60 }
  0x7e   : > { %1017 = vmatpush1.bf16.msra.mxu0 %v1869_v37  ;;  %1721 = vmatprep.subr.bf16.mxu1 %v1948_v61 }
  0x7f   : > { %1018 = vmatprep.subr.bf16.mxu0 %v1870_v38  ;;  %v1902_v38 = vld [vmem:[#allocation2 + $0x124] ss:$8 sps:$4 sm:$0xff]  }
  0x81   : > { %1722 = vmatpush3.bf16.msra.mxu1 %v1949_v62  ;;  %v1906_v62 = vld [vmem:[#allocation2 + $0x140] ss:$8 sps:$4 sm:$0xff]  }
  0x82   : > { %1019 = vmatpush1.bf16.msra.mxu0 %v1872_v39  ;;  %1723 = vmatprep.subr.bf16.mxu1 %v1950_v63 }
  0x83   : > { %1020 = vmatprep.subr.bf16.mxu0 %v1873_v40  ;;  %v408_v40 = vrot.slane %v395_v5, %v407_v28  ;;  %v1924_v28 = vld [vmem:[#allocation2 + $0x1a0] ss:$8 sps:$4 sm:$0xff]  }
  0x85   : > { %1724 = vmatpush3.bf16.msra.mxu1 %v1951_v0 }
  0x86   : > { %1021 = vmatpush1.bf16.msra.mxu0 %v1875_v41  ;;  %1725 = vmatprep.subr.bf16.mxu1 %v1952_v1  ;;  %v1911_v1 = vld [vmem:[#allocation2 + $0x154] ss:$8 sps:$4 sm:$0xff]  }
  0x87   : > { %1022 = vmatprep.subr.bf16.mxu0 %v1876_v42  ;;  %v412_v42 = vrot.slane %v395_v5, %v411_v31  ;;  %v1932_v31 = vld [vmem:[#allocation2 + $0x1c4] ss:$8 sps:$4 sm:$0xff]  }
  0x8a   : > { %1023 = vmatpush1.bf16.msra.mxu0 %v1878_v43 }
  0x8b   : > { %1024 = vmatprep.subr.bf16.mxu0 %v1879_v44  ;;  %v1900_v44 = vld [vmem:[#allocation2 + $0x120] ss:$8 sps:$4 sm:$0xff]  }
  0x8e   : > { %1025 = vmatpush1.bf16.msra.mxu0 %v1881_v45 }
  0x8f   : > { %1026 = vmatprep.subr.bf16.mxu0 %v1882_v46 }
  0x92   : > { %1027 = vmatpush1.bf16.msra.mxu0 %v1884_v47  ;;  %v1905_v47 = vld [vmem:[#allocation2 + $0x134] ss:$8 sps:$4 sm:$0xff]  }
  0x93   : > { %1028 = vmatprep.subr.bf16.mxu0 %v1885_v48 }
  0x96   : > { %1029 = vmatpush1.bf16.msra.mxu0 %v1887_v49 }
  0x97   : > { %1030 = vmatprep.subr.bf16.mxu0 %v1888_v50 }
  0x9a   : > { %1031 = vmatpush1.bf16.msra.mxu0 %v1890_v51 }
  0x9b   : > { %1032 = vmatprep.subr.bf16.mxu0 %v1891_v52 }
  0x9e   : > { %1033 = vmatpush1.bf16.msra.mxu0 %v1893_v53 }
  0x9f   : > { %1055 = vmatprep.subr.bf16.mxu0 %v1896_v54 }
 0x137   : > { %v510_v9 = vpop.f32.mrb[0].mxu1 }
 0x138   : > { %v511_v10 = vadd.f32 %v510_v9, %v400_v7  ;;  %v512_v11 = vpop.f32.mrb[1].mxu1 }
 0x139   : > { %v513_v12 = vadd.f32 %v512_v11, %v404_v8  ;;  %v514_v13 = vpop.f32.mrb[2].mxu1 }
 0x13a   : > { %v515_v14 = vadd.f32 %v514_v13, %v400_v7  ;;  %v516_v15 = vpop.f32.mrb[3].mxu1  ;;  %v582_v17 = vmax.f32 %v511_v10, 0.0 }
 0x13b   : > { %v517_v16 = vadd.f32 %v516_v15, %v404_v8  ;;  %v583_v19 = vmax.f32 %v513_v12, 0.0  ;;  %v1909_v12 = vld [vmem:[#allocation2 + $0x150] ss:$8 sps:$4 sm:$0xff]   ;;  %v1914_v15 = vld [vmem:[#allocation2 + $0x164] ss:$8 sps:$4 sm:$0xff]  }
 0x13c   : > { %v586_v18 = vmax.f32 %v515_v14, 0.0 }
 0x13d   : > { %v587_v20 = vmax.f32 %v517_v16, 0.0 }
 0x13e   : > { %v598_v21 = vpack.c.bf16 %v586_v18, %v582_v17 }
 0x13f   : > { %v599_v22 = vpack.c.bf16 %v587_v20, %v583_v19  ;;  %v520_v24 = vpop.f32.mrb[4].mxu1  ;;  %v1912_v19 = vld [vmem:[#allocation2 + $0x160] ss:$8 sps:$4 sm:$0xff]  }
 0x140   : > { %v521_v26 = vadd.f32 %v520_v24, %v400_v7  ;;  %v522_v27 = vpop.f32.mrb[5].mxu1  ;;  %v1918_v24 = vld [vmem:[#allocation2 + $0x180] ss:$8 sps:$4 sm:$0xff]  }
 0x141   : > { %1034 = vmatprep.mubr.bf16.mxu0 %v599_v22  ;;  %v523_v29 = vadd.f32 %v522_v27, %v404_v8  ;;  %v524_v30 = vpop.f32.mrb[6].mxu1  ;;  %v1915_v22 = vld [vmem:[#allocation2 + $0x170] ss:$8 sps:$4 sm:$0xff]   ;;  %v1926_v27 = vld [vmem:[#allocation2 + $0x1a4] ss:$8 sps:$4 sm:$0xff]  }
 0x142   : > { %1035 = vmatmul.mubr.bf16.vlgmr.msra.gmra.mrb[0].mxu0 %v598_v21  ;;  %v590_v32 = vmax.f32 %v521_v26, 0.0  ;;  %v525_v33 = vadd.f32 %v524_v30, %v400_v7  ;;  %v526_v34 = vpop.f32.mrb[7].mxu1  ;;  %v1917_v21 = vld [vmem:[#allocation2 + $0x174] ss:$8 sps:$4 sm:$0xff]   ;;  %v1921_v26 = vld [vmem:[#allocation2 + $0x190] ss:$8 sps:$4 sm:$0xff]  }
 0x143   : > { %1056 = vmatpush1.bf16.msra.mxu0 %v1894_v23  ;;  %v591_v36 = vmax.f32 %v523_v29, 0.0  ;;  %v527_v37 = vadd.f32 %v526_v34, %v404_v8  ;;  %v1920_v23 = vld [vmem:[#allocation2 + $0x184] ss:$8 sps:$4 sm:$0xff]   ;;  %v1929_v29 = vld [vmem:[#allocation2 + $0x1b4] ss:$8 sps:$4 sm:$0xff]  }
 0x144   : > { %1057 = vmatprep.subr.bf16.mxu0 %v1899_v25  ;;  %v594_v39 = vmax.f32 %v525_v33, 0.0  ;;  %v1923_v25 = vld [vmem:[#allocation2 + $0x194] ss:$8 sps:$4 sm:$0xff]   ;;  %v1927_v30 = vld [vmem:[#allocation2 + $0x1b0] ss:$8 sps:$4 sm:$0xff]  }
 0x145   : > { %v595_v41 = vmax.f32 %v527_v37, 0.0  ;;  %v1935_v33 = vld [vmem:[#allocation2 + $0x1d4] ss:$8 sps:$4 sm:$0xff]   ;;  %v1933_v34 = vld [vmem:[#allocation2 + $0x1d0] ss:$8 sps:$4 sm:$0xff]  }
 0x146   : > { %v602_v43 = vpack.c.bf16 %v594_v39, %v590_v32  ;;  %v1930_v32 = vld [vmem:[#allocation2 + $0x1c0] ss:$8 sps:$4 sm:$0xff]   ;;  %v1941_v37 = vld [vmem:[#allocation2 + $0x1f4] ss:$8 sps:$4 sm:$0xff]  }
 0x147   : > { %1058 = vmatpush1.bf16.msra.mxu0 %v1897_v35  ;;  %v603_v45 = vpack.c.bf16 %v595_v41, %v591_v36  ;;  %v563_v46 = vpop.f32.mrb[8].mxu1  ;;  %v1938_v35 = vld [vmem:[#allocation2 + $0x1e4] ss:$8 sps:$4 sm:$0xff]   ;;  %v1936_v36 = vld [vmem:[#allocation2 + $0x1e0] ss:$8 sps:$4 sm:$0xff]   ;;  %v1955_v41 = vld [vmem:[#allocation4 + $0x30] sm:$0xff]  }
 0x148   : > { %1059 = vmatprep.subr.bf16.mxu0 %v1902_v38  ;;  %v564_v48 = vadd.f32 %v563_v46, %v408_v40  ;;  %v565_v49 = vpop.f32.mrb[9].mxu1  ;;  %v1939_v38 = vld [vmem:[#allocation2 + $0x1f0] ss:$8 sps:$4 sm:$0xff]   ;;  %v1953_v39 = vld [vmem:[#allocation4 + $0x28] sm:$0xff]  }
 0x149   : > { %v566_v50 = vadd.f32 %v565_v49, %v412_v42  ;;  %1044 = vmatprep.mubr.bf16.mxu0 %v603_v45  ;;  %v567_v51 = vpop.f32.mrb[10].mxu1  ;;  %1726 = vmatpush3.bf16.msra.mxu1 %v1953_v39  ;;  %v670_v45 = vld [vmem:[%s2346_s4] sm:$0x3] }
 0x14a   : > { %v584_v52 = vmax.f32 %v564_v48, 0.0  ;;  %v568_v53 = vadd.f32 %v567_v51, %v408_v40  ;;  %1045 = vmatmul.mubr.bf16.gmra.mrb[4].mxu0 %v602_v43  ;;  %v569_v54 = vpop.f32.mrb[11].mxu1  ;;  %v1957_v43 = vld [vmem:[#allocation4 + $0x38] sm:$0xff]   ;;  %v675_v46 = vrot.slane %v670_v45, %v399_v4 }
 0x14b   : > { %1060 = vmatpush1.bf16.msra.mxu0 %v1900_v44  ;;  %v585_v56 = vmax.f32 %v566_v50, 0.0  ;;  %v570_v57 = vadd.f32 %v569_v54, %v412_v42  ;;  %v1958_v44 = vld [vmem:[#allocation6] sm:$0xff]  }
 0x14c   : > { %1061 = vmatprep.subr.bf16.mxu0 %v1905_v47  ;;  %v588_v59 = vmax.f32 %v568_v53, 0.0  ;;  %v679_v47 = vrot.slane %v670_v45, %v403_v6 }
 0x14d   : > { %v589_v60 = vmax.f32 %v570_v57, 0.0 }
 0x14e   : > { %v2319_v61 = vpack.c.bf16 %v588_v59, %v584_v52 }
 0x14f   : > { %1062 = vmatpush1.bf16.msra.mxu0 %v1903_v55  ;;  %v601_v63 = vpack.c.bf16 %v589_v60, %v585_v56  ;;  %v573_v0 = vpop.f32.mrb[12].mxu1 }
 0x150   : > { %1063 = vmatprep.subr.bf16.mxu0 %v1908_v58  ;;  %v574_v2 = vadd.f32 %v573_v0, %v408_v40  ;;  %v575_v5 = vpop.f32.mrb[13].mxu1  ;;  %v1959_v0 = vld [vmem:[#allocation6 + $0x8] sm:$0xff]  }
 0x151   : > { %v576_v7 = vadd.f32 %v575_v5, %v412_v42  ;;  %v577_v8 = vpop.f32.mrb[14].mxu1  ;;  %1087 = vmatprep.mubr.bf16.mxu0 %v601_v63 }
 0x152   : > { %v592_v9 = vmax.f32 %v574_v2, 0.0  ;;  %v578_v10 = vadd.f32 %v577_v8, %v408_v40  ;;  %v579_v11 = vpop.f32.mrb[15].mxu1  ;;  %v1954_v40 = vld [vmem:[#allocation4 + $0x70] sm:$0xff]  }
 0x153   : > { %1064 = vmatpush1.bf16.msra.mxu0 %v1906_v62  ;;  %v593_v13 = vmax.f32 %v576_v7, 0.0  ;;  %v580_v14 = vadd.f32 %v579_v11, %v412_v42  ;;  %1727 = vmatprep.subr.bf16.mxu1 %v1954_v40  ;;  %v1956_v42 = vld [vmem:[#allocation4 + $0x78] sm:$0xff]  }
 0x154   : > { %1065 = vmatprep.subr.bf16.mxu0 %v1911_v1  ;;  %v596_v16 = vmax.f32 %v578_v10, 0.0  ;;  %1728 = vmatpush3.bf16.msra.mxu1 %v1955_v41 }
 0x155   : > { %v597_v17 = vmax.f32 %v580_v14, 0.0  ;;  %1729 = vmatprep.subr.bf16.mxu1 %v1956_v42  ;;  %v1961_v14 = vld [vmem:[#allocation6 + $0x18] sm:$0xff]   ;;  %v1685_v42 = vld [vmem:[%s2350_s8] ss:$0 sm:$0xff] }
 0x156   : > { %v604_v18 = vpack.c.bf16 %v596_v16, %v592_v9  ;;  %v1960_v9 = vld [vmem:[#allocation6 + $0x10] sm:$0xff]   ;;  %v1963_v16 = vld [vmem:[#allocation6 + $0x28] sm:$0xff]  }
 0x157   : > { %1066 = vmatpush1.bf16.msra.mxu0 %v1909_v12  ;;  %v605_v20 = vpack.c.bf16 %v597_v17, %v593_v13  ;;  %v1964_v17 = vld [vmem:[#allocation6 + $0x30] sm:$0xff]  }
 0x158   : > { %1067 = vmatprep.subr.bf16.mxu0 %v1914_v15  ;;  %1730 = vmatpush3.bf16.msra.mxu1 %v1957_v43  ;;  %v1962_v15 = vld [vmem:[#allocation6 + $0x20] sm:$0xff]  }
 0x159   : > { %1753 = vmatprep.subr.bf16.mxu1 %v1958_v44 }
 0x15b   : > { %1068 = vmatpush1.bf16.msra.mxu0 %v1912_v19 }
 0x15c   : > { %1069 = vmatprep.subr.bf16.mxu0 %v1917_v21 }
 0x15f   : > { %1070 = vmatpush1.bf16.msra.mxu0 %v1915_v22 }
 0x160   : > { %1071 = vmatprep.subr.bf16.mxu0 %v1920_v23 }
 0x163   : > { %1072 = vmatpush1.bf16.msra.mxu0 %v1918_v24 }
 0x164   : > { %1073 = vmatprep.subr.bf16.mxu0 %v1923_v25 }
 0x167   : > { %1074 = vmatpush1.bf16.msra.mxu0 %v1921_v26 }
 0x168   : > { %1075 = vmatprep.subr.bf16.mxu0 %v1926_v27 }
 0x16b   : > { %1076 = vmatpush1.bf16.msra.mxu0 %v1924_v28 }
 0x16c   : > { %1077 = vmatprep.subr.bf16.mxu0 %v1929_v29 }
 0x16f   : > { %1078 = vmatpush1.bf16.msra.mxu0 %v1927_v30 }
 0x170   : > { %1079 = vmatprep.subr.bf16.mxu0 %v1932_v31 }
 0x173   : > { %1080 = vmatpush1.bf16.msra.mxu0 %v1930_v32 }
 0x174   : > { %1081 = vmatprep.subr.bf16.mxu0 %v1935_v33 }
 0x177   : > { %1082 = vmatpush1.bf16.msra.mxu0 %v1933_v34 }
 0x178   : > { %1083 = vmatprep.subr.bf16.mxu0 %v1938_v35 }
 0x17b   : > { %1084 = vmatpush1.bf16.msra.mxu0 %v1936_v36 }
 0x17c   : > { %1085 = vmatprep.subr.bf16.mxu0 %v1941_v37 }
 0x17f   : > { %1086 = vmatpush1.bf16.msra.mxu0 %v1939_v38 }
 0x182   : > { %1088 = vmatmul.mubr.bf16.vlgmr.msra.gmra.mrb[0].mxu0 %v2319_v61 }
 0x183   : > { %1097 = vmatprep.mubr.bf16.mxu0 %v605_v20  ;;  %v1668_v20 = vld [vmem:[%s2348_s6] ss:$0 sm:$0xff] }
 0x18a   : > { %1098 = vmatmul.mubr.bf16.gmra.mrb[4].mxu0 %v604_v18  ;;  %v1965_v18 = vld [vmem:[#allocation6 + $0x38] sm:$0xff]  }
 0x255   : > { %v1089_v48 = vpop.f32.mrb[0].mxu0 }
 0x256   : > { %v1773_v49 = vadd.f32 %v1089_v48, %v675_v46  ;;  %v1091_v50 = vpop.f32.mrb[1].mxu0 }
 0x257   : > { %v1774_v51 = vadd.f32 %v1091_v50, %v679_v47  ;;  %v1093_v52 = vpop.f32.mrb[2].mxu0 }
 0x258   : > { %v1775_v53 = vadd.f32 %v1093_v52, %v675_v46  ;;  %v1095_v54 = vpop.f32.mrb[3].mxu0  ;;  %v1108_v56 = vmax.f32 %v1773_v49, 0.0 }
 0x259   : > { %v1776_v55 = vadd.f32 %v1095_v54, %v679_v47  ;;  %v1109_v58 = vmax.f32 %v1774_v51, 0.0 }
 0x25a   : > { %v1110_v57 = vmax.f32 %v1775_v53, 0.0 }
 0x25b   : > { %v1111_v59 = vmax.f32 %v1776_v55, 0.0 }
 0x25c   : > { %v1116_v60 = vpack.c.bf16 %v1110_v57, %v1108_v56 }
 0x25d   : > { %v1117_v61 = vpack.c.bf16 %v1111_v59, %v1109_v58  ;;  %v1099_v62 = vpop.f32.mrb[4].mxu0 }
 0x25e   : > { %v1777_v63 = vadd.f32 %v1099_v62, %v675_v46  ;;  %v1101_v4 = vpop.f32.mrb[5].mxu0 }
 0x25f   : > { %v1778_v3 = vadd.f32 %v1101_v4, %v679_v47  ;;  %v1103_v6 = vpop.f32.mrb[6].mxu0  ;;  %1287 = vmatprep.mubr.bf16.mxu1 %v1117_v61 }
 0x260   : > { %v1779_v1 = vadd.f32 %v1103_v6, %v675_v46  ;;  %v1105_v2 = vpop.f32.mrb[7].mxu0  ;;  %1288 = vmatmul.mubr.bf16.vlgmr.msra.gmra.mrb[16].mxu1 %v1116_v60  ;;  %v1112_v7 = vmax.f32 %v1777_v63, 0.0 }
 0x261   : > { %v1780_v5 = vadd.f32 %v1105_v2, %v679_v47  ;;  %1754 = vmatpush3.bf16.msra.mxu1 %v1958_v44  ;;  %v1113_v10 = vmax.f32 %v1778_v3, 0.0 }
 0x262   : > { %v1114_v8 = vmax.f32 %v1779_v1, 0.0  ;;  %1755 = vmatprep.subr.bf16.mxu1 %v1959_v0 }
 0x263   : > { %v1115_v11 = vmax.f32 %v1780_v5, 0.0 }
 0x264   : > { %v1118_v12 = vpack.c.bf16 %v1114_v8, %v1112_v7 }
 0x265   : > { %v1119_v13 = vpack.c.bf16 %v1115_v11, %v1113_v10  ;;  %1756 = vmatpush3.bf16.msra.mxu1 %v1959_v0 }
 0x266   : > { %1757 = vmatprep.subr.bf16.mxu1 %v1960_v9 }
 0x267   : > { %1295 = vmatprep.mubr.bf16.mxu1 %v1119_v13 }
 0x268   : > { %1296 = vmatmul.mubr.bf16.gmra.mrb[20].mxu1 %v1118_v12 }
 0x269   : > { %1758 = vmatpush3.bf16.msra.mxu1 %v1960_v9 }
 0x26a   : > { %1759 = vmatprep.subr.bf16.mxu1 %v1961_v14 }
 0x26d   : > { %1760 = vmatpush3.bf16.msra.mxu1 %v1961_v14 }
 0x26e   : > { %1761 = vmatprep.subr.bf16.mxu1 %v1962_v15 }
 0x271   : > { %1762 = vmatpush3.bf16.msra.mxu1 %v1962_v15 }
 0x272   : > { %1763 = vmatprep.subr.bf16.mxu1 %v1963_v16 }
 0x275   : > { %1764 = vmatpush3.bf16.msra.mxu1 %v1963_v16 }
 0x276   : > { %1765 = vmatprep.subr.bf16.mxu1 %v1964_v17 }
 0x279   : > { %1766 = vmatpush3.bf16.msra.mxu1 %v1964_v17 }
 0x27a   : > { %1767 = vmatprep.subr.bf16.mxu1 %v1965_v18 }
 0x27d   : > { %1768 = vmatpush3.bf16.msra.mxu1 %v1965_v18 }
 0x333   : > { %v1731_v19 = vpop.f32.mrb[16].mxu1 }
 0x334   : > { %v1732_v21 = vpop.f32.mrb[17].mxu1 }
 0x335   : > { %v1733_v22 = vadd.f32 %v1732_v21, %v1731_v19  ;;  %v1734_v23 = vpop.f32.mrb[18].mxu1 }
 0x336   : > { %v1735_v24 = vpop.f32.mrb[19].mxu1 }
 0x337   : > { %v1290_v25 = vadd.f32 %v1733_v22, %v1668_v20  ;;  %v1736_v26 = vadd.f32 %v1735_v24, %v1734_v23 }
 0x339   : > { %v1293_v27 = vadd.f32 %v1736_v26, %v1668_v20  ;;  %v1304_v28 = vmax.f32 %v1290_v25, 0.0 }
 0x33b   : > { %v1305_v29 = vmax.f32 %v1293_v27, 0.0  ;;  %v1737_v30 = vpop.f32.mrb[20].mxu1 }
 0x33c   : > { %v1738_v31 = vpop.f32.mrb[21].mxu1 }
 0x33d   : > { %v1739_v32 = vadd.f32 %v1738_v31, %v1737_v30  ;;  %v1740_v33 = vpop.f32.mrb[22].mxu1  ;;  %v1308_v34 = vpack.c.bf16 %v1305_v29, %v1304_v28 }
 0x33e   : > { %v1741_v35 = vpop.f32.mrb[23].mxu1 }
 0x33f   : > { %v1298_v36 = vadd.f32 %v1739_v32, %v1668_v20  ;;  %v1742_v37 = vadd.f32 %v1741_v35, %v1740_v33  ;;  %1769 = vmatprep.mubr.bf16.mxu1 %v1308_v34 }
 0x341   : > { %v1301_v38 = vadd.f32 %v1742_v37, %v1668_v20  ;;  %v1306_v39 = vmax.f32 %v1298_v36, 0.0 }
 0x343   : > { %v1307_v40 = vmax.f32 %v1301_v38, 0.0 }
 0x345   : > { %v1309_v41 = vpack.c.bf16 %v1307_v40, %v1306_v39 }
 0x347   : > { %1770 = vmatmul.mubr.bf16.vlgmr.msra.gmra.mrb[24].mxu1 %v1309_v41 }
 0x41a   : > { %v1771_v43 = vpop.f32.mrb[24].mxu1 }
 0x41b   : > { %v1424_v44 = vadd.f32 %v1771_v43, %v1685_v42  ;;  %v1415_v45 = vpop.f32.mrb[25].mxu1 }
 0x41c   : > { %v1416_v46 = vadd.f32 %v1685_v42, %v1415_v45  ;;  %v1772_v47 = vpop.f32.mrb[26].mxu1 }
 0x41d   : > { %1434 = vmax.xlane.f32.xlu1 %v1424_v44  ;;  %v1418_v48 = vpop.f32.mrb[27].mxu1  ;;  %v1427_v49 = vadd.f32 %v1772_v47, %v1685_v42 }
 0x41e   : > { %1430 = vmax.xlane.f32.xlu0 %v1416_v46  ;;  %v1419_v50 = vadd.f32 %v1685_v42, %v1418_v48 }
 0x421   : > { %1436 = vmax.xlane.f32.xlu1 %v1427_v49 }
 0x422   : > { %1432 = vmax.xlane.f32.xlu0 %v1419_v50 }
 0x4aa   : > { %v1435_v51 = vpop.xlane.xlu1 %1434 }
 0x4ab   : > { %v1440_v52 = vsub.f32 %v1424_v44, %v1435_v51  ;;  %v1431_v53 = vpop.xlane.xlu0 %1430 }
 0x4ac   : > { %v1438_v54 = vsub.f32 %v1416_v46, %v1431_v53 }
 0x4ad   : > { %v1446_v57 = vmul.f32 1.442695, %v1440_v52 }
 0x4ae   : > { %v1442_v55 = vmul.f32 1.442695, %v1438_v54  ;;  %v1437_v56 = vpop.xlane.xlu1 %1436 }
 0x4af   : > { %v1433_v58 = vpop.xlane.xlu0 %1432  ;;  %v1441_v59 = vsub.f32 %v1427_v49, %v1437_v56 }
 0x4b0   : > { %1966 = vpow2.f32 %v1442_v55  ;;  %v1439_v60 = vsub.f32 %v1419_v50, %v1433_v58 }
 0x4b1   : > { %1968 = vpow2.f32 %v1446_v57  ;;  %v1448_v62 = vmul.f32 1.442695, %v1441_v59 }
 0x4b2   : > { %v1444_v61 = vmul.f32 1.442695, %v1439_v60 }
 0x4b4   : > { %1970 = vpow2.f32 %v1444_v61 }
 0x4b5   : > { %1972 = vpow2.f32 %v1448_v62 }
 0x4ba   : > { %v1967_v63 = vpop.eup %1966 }
 0x4bb   : > { %1450 = vadd.xlane.f32.xlu0 %v1967_v63  ;;  %v1969_v4 = vpop.eup %1968 }
 0x4be   : > { %v1971_v0 = vpop.eup %1970 }
 0x4bf   : > { %1454 = vadd.xlane.f32.xlu0 %v1969_v4  ;;  %1452 = vadd.xlane.f32.xlu1 %v1971_v0  ;;  %v1973_v3 = vpop.eup %1972 }
 0x4c3   : > { %1456 = vadd.xlane.f32.xlu1 %v1973_v3 }
 0x548   : > { %v1451_v6 = vpop.xlane.xlu0 %1450 }
 0x549   : > { %1974 = vrcp.f32 %v1451_v6 }
 0x54c   : > { %v1453_v1 = vpop.xlane.xlu1 %1452  ;;  %v1455_v2 = vpop.xlane.xlu0 %1454 }
 0x54d   : > { %1976 = vrcp.f32 %v1453_v1 }
 0x54e   : > { %1978 = vrcp.f32 %v1455_v2 }
 0x550   : > { %v1457_v5 = vpop.xlane.xlu1 %1456 }
 0x551   : > { %1980 = vrcp.f32 %v1457_v5 }
 0x553   : > { %v1975_v7 = vpop.eup %1974 }
 0x554   : > { %v1466_v9 = vmul.f32 %v1975_v7, %v1967_v63 }
 0x557   : > { %v1977_v8 = vpop.eup %1976 }
 0x558   : > { %v1467_v10 = vmul.f32 %v1977_v8, %v1971_v0  ;;  %v1979_v11 = vpop.eup %1978 }
 0x559   : > { %v1468_v14 = vmul.f32 %v1979_v11, %v1969_v4 }
 0x55a   : > { %v1707_v12 = vpack.c.bf16 %v1467_v10, %v1466_v9 }
 0x55b   : > { %v1981_v13 = vpop.eup %1980 }
 0x55c   : > { %1708 = vst [vmem:[%s378_s24] sm:$0xff] %v1707_v12   ;;  %v1469_v15 = vmul.f32 %v1981_v13, %v1973_v3 }
 0x55e   : > { %v1712_v16 = vpack.c.bf16 %v1469_v15, %v1468_v14 }
 0x560   : > { %1714 = vst [vmem:[%s378_s24 + $0x8] sm:$0xff] %v1712_v16  }
 0x561 PF: > { %s21_s30 = sadd.s32 1, %s2080_s30  }
 0x562   : > { %p18_p3 = scmp.ge.s32.totalorder %s21_s30, 4  }
 0x564   :  { %20 = sbr.rel (!%p18_p3) target bundleno = 2 (0x2), region = 99 }
 0x56b   :  { %1512 = vsyncpa [#allocation3], 1 }
 0x56c   :  { %1514 = vsyncpa [#allocation3 + $0x1], 1 }
 0x56d   :  { %1515 = vsyncpa [#allocation5], 1 }

</bundles_post_ra>
